<compile_context>
chip_gen: v6e
topology: v6e:2x2x1
jax: 0.10.0
libtpu: 0.0.40
codegen_flags: <defaults>
</compile_context>

<pallas_src>
import jax
import jax.numpy as jnp
from jax.experimental import pallas as pl
from jax.experimental.pallas import tpu as pltpu


def _round_up(n, m):
    return ((n + m - 1) // m) * m


def _cdiv(a, b):
    return (a + b - 1) // b


def _discriminator_kernel(x_ref, w1_ref, b1_ref, w2_ref, b2_ref,
                          w3_ref, b3_ref, o_ref):
    x = x_ref[...]                                                    # [TB, 784]

    # Linear(784 -> 256) + LeakyReLU(0.2)   (Dropout = identity in eval)
    h1 = jnp.dot(x, w1_ref[...], preferred_element_type=jnp.float32) + b1_ref[...]
    h1 = jnp.where(h1 >= 0.0, h1, 0.2 * h1)                           # [TB, 256] f32

    # Linear(256 -> 64) + LeakyReLU(0.2)    (Dropout = identity in eval)
    h2 = jnp.dot(h1.astype(w2_ref.dtype), w2_ref[...],
                 preferred_element_type=jnp.float32) + b2_ref[...]
    h2 = jnp.where(h2 >= 0.0, h2, 0.2 * h2)                           # [TB, 64] f32

    # Linear(64 -> 1): broadcast-multiply + lane reduction.  Keeps the MXU
    # free (a 1-wide matmul wastes 127/128 lanes) and yields a lane-dense
    # [TB] row instead of a [TB, 1] column of masked stores.
    h3 = jnp.sum(h2 * w3_ref[...], axis=-1) + b3_ref[0, 0]            # [TB]

    # Sigmoid: exp on the EUP; exact divide (approx reciprocal can exceed 1).
    o_ref[0, 0, :] = 1.0 / (1.0 + jnp.exp(-h3))


def discriminator_forward(x, params, *, block_b=None):
    """x: [B, 784] float32 or bfloat16 (compute dtype follows x.dtype).

    Returns [B, 1] float32 in (0, 1)."""
    w1, b1, w2, b2, w3, b3 = params
    B, F = x.shape

    # Do NOT cast x here: a wrapper-side astype is a separate HBM read+write
    # pass that eats the bandwidth savings of bf16.  Source x in bf16 if you
    # want the 2x HBM-traffic reduction.
    compute_dtype = x.dtype

    if block_b is None:
        # HBM-bound on streaming x: bigger tiles reach ~85% of HBM roofline
        # and amortize per-grid-step overhead.  ~10 MiB peak VMEM at these
        # sizes fits every generation's default scoped-VMEM limit.
        block_b = 2048 if compute_dtype == jnp.bfloat16 else 1024

    # Batch tile: multiple of 8 (sublane).
    TB = min(block_b, _round_up(B, 8))
    G = _cdiv(B, TB)
    # v7x has 2 TensorCores: make sure the "parallel" grid axis has >= 2
    # steps when the batch is big enough to be worth splitting.
    if G == 1 and B >= 256:
        TB = _round_up(_cdiv(B, 2), 8)
        G = _cdiv(B, TB)

    # Weights/biases are small (~0.9 MiB f32); cast once, stay VMEM-resident.
    w1c = w1.astype(compute_dtype)
    w2c = w2.astype(compute_dtype)
    b1f = b1.astype(jnp.float32)
    b2f = b2.astype(jnp.float32)
    w3_row = w3.reshape(1, -1).astype(jnp.float32)   # [1, 64]
    b3_s = b3.reshape(1, 1).astype(jnp.float32)      # scalar, lives in SMEM

    def const(shape):
        # Resident block: same block index every grid step -> DMA'd once,
        # never re-fetched across grid iterations.
        return pl.BlockSpec(shape, lambda i, _s=shape: tuple(0 for _ in _s))

    out = pl.pallas_call(
        _discriminator_kernel,
        out_shape=jax.ShapeDtypeStruct((G, 1, TB), jnp.float32),
        grid=(G,),
        in_specs=[
            # x is streamed unpadded (no wrapper jnp.pad).  When TB does not
            # divide B, the last block reads unspecified rows; each output
            # row depends only on its own x row, and the extra rows are
            # sliced away below, so they are never observed.
            pl.BlockSpec((TB, F), lambda i: (i, 0)),
            const(w1c.shape),                             # w1  [784, 256]
            const(b1f.shape),                             # b1  [1, 256]
            const(w2c.shape),                             # w2  [256, 64]
            const(b2f.shape),                             # b2  [1, 64]
            const(w3_row.shape),                          # w3  [1, 64]
            pl.BlockSpec(memory_space=pltpu.MemorySpace.SMEM),  # b3 scalar
        ],
        # Lane-dense output row per tile (unmasked vst for TB >= 128).
        out_specs=pl.BlockSpec((1, 1, TB), lambda i: (i, 0, 0)),
        compiler_params=pltpu.CompilerParams(
            # Batch tiles are independent -> shard across v7x's two TCs.
            dimension_semantics=("parallel",)),
    )(x, w1c, b1f, w2c, b2f, w3_row, b3_s)

    return out.reshape(G * TB, 1)[:B]


def init_params(key):
    """Deterministic init matching PyTorch Linear default: U(-1/sqrt(fan_in), +)."""
    def linear(key, fan_in, fan_out):
        kw, kb = jax.random.split(key)
        bound = 1.0 / jnp.sqrt(fan_in)
        w = jax.random.uniform(kw, (fan_in, fan_out), jnp.float32, -bound, bound)
        b = jax.random.uniform(kb, (1, fan_out), jnp.float32, -bound, bound)
        return w, b

    k1, k2, k3 = jax.random.split(key, 3)
    w1, b1 = linear(k1, 784, 256)
    w2, b2 = linear(k2, 256, 64)
    w3, b3 = linear(k3, 64, 1)
    return (w1, b1, w2, b2, w3, b3)


def reference_forward(x, params):
    """Pure-JAX reference for correctness check."""
    w1, b1, w2, b2, w3, b3 = params
    x = x.astype(jnp.float32)
    h1 = x @ w1 + b1
    h1 = jnp.where(h1 >= 0.0, h1, 0.2 * h1)
    h2 = h1 @ w2 + b2
    h2 = jnp.where(h2 >= 0.0, h2, 0.2 * h2)
    h3 = h2 @ w3 + b3
    return jax.nn.sigmoid(h3)


if __name__ == "__main__":
    key = jax.random.PRNGKey(0)
    k_x, k_p, k_x2, k_x3 = jax.random.split(key, 4)
    params = init_params(k_p)

    # Tiny batch (single small tile).
    B = 8
    x = jax.random.normal(k_x, (B, 784), dtype=jnp.float32)
    out = jax.block_until_ready(discriminator_forward(x, params))
    ref = reference_forward(x, params)
    assert out.shape == (B, 1)
    assert jnp.allclose(out, ref, atol=5e-3, rtol=0), "f32 mismatch (small B)"

    # Non-multiple batch: no wrapper pad, 2 grid steps, ragged last block.
    B2 = 300
    x2 = jax.random.normal(k_x2, (B2, 784), dtype=jnp.float32)
    out2 = jax.block_until_ready(discriminator_forward(x2, params))
    ref2 = reference_forward(x2, params)
    assert out2.shape == (B2, 1)
    assert jnp.allclose(out2, ref2, atol=5e-3, rtol=0), "f32 mismatch (ragged B)"

    # x sourced as bf16 in HBM (no wrapper cast) — halves x HBM traffic.
    x2_bf16 = x2.astype(jnp.bfloat16)
    out2_bf16 = jax.block_until_ready(discriminator_forward(x2_bf16, params))
    assert out2_bf16.shape == (B2, 1)
    assert jnp.allclose(out2_bf16, ref2, atol=5e-2, rtol=0), "bf16 mismatch"

    # Multi-tile f32 batch with a ragged last block (1024 + 76 rows).
    B3 = 1100
    x3 = jax.random.normal(k_x3, (B3, 784), dtype=jnp.float32)
    out3 = jax.block_until_ready(discriminator_forward(x3, params))
    ref3 = reference_forward(x3, params)
    assert out3.shape == (B3, 1)
    assert jnp.allclose(out3, ref3, atol=5e-3, rtol=0), "f32 mismatch (multi-tile)"

    print("KERNEL_OK")
</pallas_src>

<mosaic_0001>
module attributes {stable_mosaic.version = 11 : i64} {
  func.func @_discriminator_kernel(%arg0: i32, %arg1: memref<8x784xf32, #tpu.memory_space<vmem>>, %arg2: memref<784x256xf32, #tpu.memory_space<vmem>>, %arg3: memref<1x256xf32, #tpu.memory_space<vmem>>, %arg4: memref<256x64xf32, #tpu.memory_space<vmem>>, %arg5: memref<1x64xf32, #tpu.memory_space<vmem>>, %arg6: memref<1x64xf32, #tpu.memory_space<vmem>>, %arg7: memref<1x1xf32, #tpu.memory_space<smem>>, %arg8: memref<1x1x8xf32, #tpu.memory_space<vmem>>) attributes {dimension_semantics = [#tpu.dimension_semantics<parallel>], iteration_bounds = array<i64: 1>, scalar_prefetch = 0 : i64, scratch_operands = 0 : i64, tpu.core_type = #tpu.core_type<tc>, window_params = [{transform_indices = @transform_0, window_bounds = array<i64: 8, 784>}, {pipeline_mode = #tpu.pipeline_mode<synchronous>, transform_indices = @transform_1, window_bounds = array<i64: 784, 256>}, {pipeline_mode = #tpu.pipeline_mode<synchronous>, transform_indices = @transform_2, window_bounds = array<i64: 1, 256>}, {pipeline_mode = #tpu.pipeline_mode<synchronous>, transform_indices = @transform_3, window_bounds = array<i64: 256, 64>}, {pipeline_mode = #tpu.pipeline_mode<synchronous>, transform_indices = @transform_4, window_bounds = array<i64: 1, 64>}, {pipeline_mode = #tpu.pipeline_mode<synchronous>, transform_indices = @transform_5, window_bounds = array<i64: 1, 64>}, {transform_indices = @transform_6, window_bounds = array<i64: 1, 1>}, {transform_indices = @transform_7, window_bounds = array<i64: 1, 1, 8>}]} {
    %c0 = arith.constant 0 : index
    %c0_0 = arith.constant 0 : index
    %0 = vector.load %arg1[%c0, %c0_0] : memref<8x784xf32, #tpu.memory_space<vmem>>, vector<8x784xf32>
    %c0_1 = arith.constant 0 : index
    %c0_2 = arith.constant 0 : index
    %1 = vector.load %arg2[%c0_1, %c0_2] : memref<784x256xf32, #tpu.memory_space<vmem>>, vector<784x256xf32>
    %cst = arith.constant dense<0.000000e+00> : vector<8x256xf32>
    %2 = tpu.matmul %0, %1, %cst {dimension_numbers = #tpu.dot_dimension_numbers<[1], [0], [0], [1], [0, 0, 1, 1], [], []>} : vector<8x784xf32>, vector<784x256xf32>, vector<8x256xf32> -> vector<8x256xf32>
    %c0_3 = arith.constant 0 : index
    %c0_4 = arith.constant 0 : index
    %3 = vector.load %arg3[%c0_3, %c0_4] : memref<1x256xf32, #tpu.memory_space<vmem>>, vector<1x256xf32>
    %4 = vector.broadcast %3 : vector<1x256xf32> to vector<8x256xf32>
    %5 = arith.addf %2, %4 : vector<8x256xf32>
    %cst_5 = arith.constant 0.000000e+00 : f32
    %6 = vector.broadcast %cst_5 : f32 to vector<8x256xf32>
    %7 = arith.cmpf oge, %5, %6 : vector<8x256xf32>
    %cst_6 = arith.constant 2.000000e-01 : f32
    %8 = vector.broadcast %cst_6 : f32 to vector<8x256xf32>
    %9 = arith.mulf %8, %5 : vector<8x256xf32>
    %10 = arith.select %7, %5, %9 : vector<8x256xi1>, vector<8x256xf32>
    %c0_7 = arith.constant 0 : index
    %c0_8 = arith.constant 0 : index
    %11 = vector.load %arg4[%c0_7, %c0_8] : memref<256x64xf32, #tpu.memory_space<vmem>>, vector<256x64xf32>
    %cst_9 = arith.constant dense<0.000000e+00> : vector<8x64xf32>
    %12 = tpu.matmul %10, %11, %cst_9 {dimension_numbers = #tpu.dot_dimension_numbers<[1], [0], [0], [1], [0, 0, 1, 1], [], []>} : vector<8x256xf32>, vector<256x64xf32>, vector<8x64xf32> -> vector<8x64xf32>
    %c0_10 = arith.constant 0 : index
    %c0_11 = arith.constant 0 : index
    %13 = vector.load %arg5[%c0_10, %c0_11] : memref<1x64xf32, #tpu.memory_space<vmem>>, vector<1x64xf32>
    %14 = vector.broadcast %13 : vector<1x64xf32> to vector<8x64xf32>
    %15 = arith.addf %12, %14 : vector<8x64xf32>
    %cst_12 = arith.constant 0.000000e+00 : f32
    %16 = vector.broadcast %cst_12 : f32 to vector<8x64xf32>
    %17 = arith.cmpf oge, %15, %16 : vector<8x64xf32>
    %cst_13 = arith.constant 2.000000e-01 : f32
    %18 = vector.broadcast %cst_13 : f32 to vector<8x64xf32>
    %19 = arith.mulf %18, %15 : vector<8x64xf32>
    %20 = arith.select %17, %15, %19 : vector<8x64xi1>, vector<8x64xf32>
    %c0_14 = arith.constant 0 : index
    %c0_15 = arith.constant 0 : index
    %21 = vector.load %arg6[%c0_14, %c0_15] : memref<1x64xf32, #tpu.memory_space<vmem>>, vector<1x64xf32>
    %22 = vector.broadcast %21 : vector<1x64xf32> to vector<8x64xf32>
    %23 = arith.mulf %20, %22 : vector<8x64xf32>
    %cst_16 = arith.constant dense<0.000000e+00> : vector<8xf32>
    %24 = vector.multi_reduction <add>, %23, %cst_16 [1] : vector<8x64xf32> to vector<8xf32>
    %c0_17 = arith.constant 0 : index
    %c0_18 = arith.constant 0 : index
    %25 = memref.load %arg7[%c0_17, %c0_18] : memref<1x1xf32, #tpu.memory_space<smem>>
    %26 = vector.broadcast %25 : f32 to vector<8xf32>
    %27 = arith.addf %24, %26 : vector<8xf32>
    %cst_19 = arith.constant 0.000000e+00 : f32
    %28 = vector.broadcast %cst_19 : f32 to vector<8xf32>
    %29 = arith.subf %28, %27 : vector<8xf32>
    %30 = math.exp %29 : vector<8xf32>
    %cst_20 = arith.constant 1.000000e+00 : f32
    %31 = vector.broadcast %cst_20 : f32 to vector<8xf32>
    %32 = arith.addf %31, %30 : vector<8xf32>
    %cst_21 = arith.constant 1.000000e+00 : f32
    %33 = vector.broadcast %cst_21 : f32 to vector<8xf32>
    %34 = arith.divf %33, %32 : vector<8xf32>
    %c0_22 = arith.constant 0 : index
    %c0_23 = arith.constant 0 : index
    %c0_24 = arith.constant 0 : index
    %35 = vector.load %arg8[%c0_22, %c0_23, %c0_24] : memref<1x1x8xf32, #tpu.memory_space<vmem>>, vector<1x1x8xf32>
    %36 = vector.shape_cast %35 : vector<1x1x8xf32> to vector<8xf32>
    %37 = vector.shape_cast %34 : vector<8xf32> to vector<1x1x8xf32>
    tpu.vector_store %arg8[%c0_22, %c0_23, %c0_24], %37 {strides = array<i32>} : memref<1x1x8xf32, #tpu.memory_space<vmem>>, vector<1x1x8xf32>,
    return
  }
  func.func @transform_0(%arg0: i32) -> (i32, i32) {
    %c0_i32 = arith.constant 0 : i32
    %c0_i32_0 = arith.constant 0 : i32
    return %arg0, %c0_i32 : i32, i32
  }
  func.func @transform_1(%arg0: i32) -> (i32, i32) {
    %c0_i32 = arith.constant 0 : i32
    %c0_i32_0 = arith.constant 0 : i32
    %c0_i32_1 = arith.constant 0 : i32
    return %c0_i32, %c0_i32_0 : i32, i32
  }
  func.func @transform_2(%arg0: i32) -> (i32, i32) {
    %c0_i32 = arith.constant 0 : i32
    %c0_i32_0 = arith.constant 0 : i32
    %c0_i32_1 = arith.constant 0 : i32
    return %c0_i32, %c0_i32_0 : i32, i32
  }
  func.func @transform_3(%arg0: i32) -> (i32, i32) {
    %c0_i32 = arith.constant 0 : i32
    %c0_i32_0 = arith.constant 0 : i32
    %c0_i32_1 = arith.constant 0 : i32
    return %c0_i32, %c0_i32_0 : i32, i32
  }
  func.func @transform_4(%arg0: i32) -> (i32, i32) {
    %c0_i32 = arith.constant 0 : i32
    %c0_i32_0 = arith.constant 0 : i32
    %c0_i32_1 = arith.constant 0 : i32
    return %c0_i32, %c0_i32_0 : i32, i32
  }
  func.func @transform_5(%arg0: i32) -> (i32, i32) {
    %c0_i32 = arith.constant 0 : i32
    %c0_i32_0 = arith.constant 0 : i32
    %c0_i32_1 = arith.constant 0 : i32
    return %c0_i32, %c0_i32_0 : i32, i32
  }
  func.func @transform_6(%arg0: i32) -> (i32, i32) {
    %c0_i32 = arith.constant 0 : i32
    %c0_i32_0 = arith.constant 0 : i32
    %c0_i32_1 = arith.constant 0 : i32
    return %c0_i32, %c0_i32_0 : i32, i32
  }
  func.func @transform_7(%arg0: i32) -> (i32, i32, i32) {
    %c0_i32 = arith.constant 0 : i32
    %c0_i32_0 = arith.constant 0 : i32
    %c0_i32_1 = arith.constant 0 : i32
    return %arg0, %c0_i32, %c0_i32_0 : i32, i32, i32
  }
}

</mosaic_0001>

<bundles_post_ra>
// kernel: tpu_custom_call.1
= control target key start
LH: loop header
LB: loop body
LE: loop exit
PB: predicated region body
PF: predicated region fallthrough
CT: control target
= control target key end

     0   :  { %13 = vsyncpa [#allocation4], 0  ;;  %s980_s0 = inlined_call_operand.vmem [shape: f32[8,784], index: 0, kind: input, shape index: {}]   ;;  %s981_s1 = inlined_call_operand.hbm [shape: f32[784,256], index: 1, kind: input, shape index: {}]   ;;  %s982_s2 = inlined_call_operand.vmem [shape: f32[1,256], index: 2, kind: input, shape index: {}]   ;;  %s983_s3 = inlined_call_operand.vmem [shape: f32[256,64], index: 3, kind: input, shape index: {}]   ;;  %s984_s4 = inlined_call_operand.vmem [shape: f32[1,64], index: 4, kind: input, shape index: {}]   ;;  %s985_s5 = inlined_call_operand.vmem [shape: f32[1,64], index: 5, kind: input, shape index: {}]   ;;  %s986_s6 = inlined_call_operand.<no memory space> [shape: f32[1,1], index: 6, kind: input, shape index: {}]   ;;  %s987_s7 = inlined_call_operand.hbm [shape: f32[1,1,8], index: 7, kind: output, shape index: {}]  }
   0x1   :  { %14 = vsyncpa [#allocation5], 0  ;;  %s800_s24 = smov [#allocation3]  }
   0x2   :  { %s22_s25 = sshll.u32 %s800_s24, 4  ;;  %s23_s25 = int_to_ptr.vmem [resolvable:$true] %s22_s25 }
   0x3   :  { %s764_s26 = scalar_lea.vmem %s23_s25, 25088  ;;  %p769_p1 = scmp.lt.s32.totalorder %s23_s25, %s23_s25 }
   0x4   :  { %p765_p0 = scmp.ne.s32.totalorder %s23_s25, %s764_s26  ;;  %p770_p2 = scmp.lt.s32.totalorder %s764_s26, %s764_s26 }
   0x6   :  { %p771_p3 = por %p770_p2, %p769_p1 }
   0x8   :  { %p772_p4 = pnand %p771_p3, %p765_p0 }
   0xa   :  { %775 = shalt.err (!%p772_p4)
}
   0xb   :  { %s801_s27 = smov 256   ;;  %s802_s28 = smov 16  }
   0xc   :  { %28 = dma.hbm_to_vmem [thread:$0]  %s981_s1, 25088, %s23_s25, [#allocation4], %s801_s27, %s801_s27, %s802_s28  }
   0xd   :  { %796 = dma.done.wait [#allocation4], 25088  }
   0xe   :  { %797 = vsyncadd [#allocation4], 4294942208  ;;  %v80_v0 = vld [vmem:[#allocation3 + $0xf8] sm:$0xff]  ;;  %v79_v1 = vld [vmem:[#allocation3 + $0xf0] sm:$0xff]  ;;  %vm257_vm0 = vcmask 130048   ;;  %vm671_vm4 = vcmask 523264  }
   0xf   :  { %v78_v2 = vld [vmem:[#allocation3 + $0xe8] sm:$0xff]  ;;  %261 = vmatprep.subr.mxu0 %v80_v0  ;;  %v144_v3 = vld [vmem:[#allocation3 + $0x2f8] sm:$0xff]  ;;  %v77_v4 = vld [vmem:[#allocation3 + $0xe0] sm:$0xff]  ;;  %vm692_vm5 = vcmask 57344  }
  0x10   :  { %v143_v5 = vld [vmem:[#allocation3 + $0x2f0] sm:$0xff]  ;;  %262 = vmatpush1.msra.mxu0 %v79_v1  ;;  %332 = vmatprep.subr.mxu1 %v144_v3  ;;  %v76_v6 = vld [vmem:[#allocation3 + $0xd8] sm:$0xff]  ;;  %v142_v7 = vld [vmem:[#allocation3 + $0x2e8] sm:$0xff] }
  0x11   :  { %263 = vmatprep.subr.mxu0 %v78_v2  ;;  %333 = vmatpush1.msra.mxu1 %v143_v5  ;;  %v75_v8 = vld [vmem:[#allocation3 + $0xd0] sm:$0xff]  ;;  %v141_v9 = vld [vmem:[#allocation3 + $0x2e0] sm:$0xff]  ;;  %v140_v10 = vld [vmem:[#allocation3 + $0x2d8] sm:$0xff] }
  0x12   :  { %264 = vmatpush1.msra.mxu0 %v77_v4  ;;  %334 = vmatprep.subr.mxu1 %v142_v7  ;;  %v74_v11 = vld [vmem:[#allocation3 + $0xc8] sm:$0xff]  ;;  %v139_v12 = vld [vmem:[#allocation3 + $0x2d0] sm:$0xff]  ;;  %v73_v13 = vld [vmem:[#allocation3 + $0xc0] sm:$0xff] }
  0x13   :  { %265 = vmatprep.subr.mxu0 %v76_v6  ;;  %335 = vmatpush1.msra.mxu1 %v141_v9  ;;  %v138_v14 = vld [vmem:[#allocation3 + $0x2c8] sm:$0xff]  ;;  %v72_v15 = vld [vmem:[#allocation3 + $0xb8] sm:$0xff]  ;;  %v137_v16 = vld [vmem:[#allocation3 + $0x2c0] sm:$0xff] }
  0x14   :  { %266 = vmatpush1.msra.mxu0 %v75_v8  ;;  %336 = vmatprep.subr.mxu1 %v140_v10  ;;  %v71_v17 = vld [vmem:[#allocation3 + $0xb0] sm:$0xff]  ;;  %v136_v18 = vld [vmem:[#allocation3 + $0x2b8] sm:$0xff]  ;;  %v70_v19 = vld [vmem:[#allocation3 + $0xa8] sm:$0xff] }
  0x15   :  { %267 = vmatprep.subr.mxu0 %v74_v11  ;;  %337 = vmatpush1.msra.mxu1 %v139_v12  ;;  %v135_v20 = vld [vmem:[#allocation3 + $0x2b0] sm:$0xff]  ;;  %v69_v21 = vld [vmem:[#allocation3 + $0xa0] sm:$0xff]  ;;  %v134_v22 = vld [vmem:[#allocation3 + $0x2a8] sm:$0xff] }
  0x16   :  { %268 = vmatpush1.msra.mxu0 %v73_v13  ;;  %338 = vmatprep.subr.mxu1 %v138_v14  ;;  %v68_v23 = vld [vmem:[#allocation3 + $0x98] sm:$0xff]  ;;  %v133_v24 = vld [vmem:[#allocation3 + $0x2a0] sm:$0xff]  ;;  %v67_v25 = vld [vmem:[#allocation3 + $0x90] sm:$0xff] }
  0x17   :  { %269 = vmatprep.subr.mxu0 %v72_v15  ;;  %339 = vmatpush1.msra.mxu1 %v137_v16  ;;  %v132_v26 = vld [vmem:[#allocation3 + $0x298] sm:$0xff]  ;;  %v66_v27 = vld [vmem:[#allocation3 + $0x88] sm:$0xff]  ;;  %v131_v28 = vld [vmem:[#allocation3 + $0x290] sm:$0xff] }
  0x18   :  { %270 = vmatpush1.msra.mxu0 %v71_v17  ;;  %340 = vmatprep.subr.mxu1 %v136_v18  ;;  %v65_v29 = vld [vmem:[#allocation3 + $0x80] sm:$0xff]  ;;  %v130_v30 = vld [vmem:[#allocation3 + $0x288] sm:$0xff]  ;;  %v64_v31 = vld [vmem:[#allocation3 + $0x78] sm:$0xff] }
  0x19   :  { %271 = vmatprep.subr.mxu0 %v70_v19  ;;  %341 = vmatpush1.msra.mxu1 %v135_v20  ;;  %v129_v32 = vld [vmem:[#allocation3 + $0x280] sm:$0xff]  ;;  %v63_v33 = vld [vmem:[#allocation3 + $0x70] sm:$0xff]  ;;  %v128_v34 = vld [vmem:[#allocation3 + $0x278] sm:$0xff] }
  0x1a   :  { %272 = vmatpush1.msra.mxu0 %v69_v21  ;;  %342 = vmatprep.subr.mxu1 %v134_v22  ;;  %v62_v35 = vld [vmem:[#allocation3 + $0x68] sm:$0xff]  ;;  %v127_v36 = vld [vmem:[#allocation3 + $0x270] sm:$0xff]  ;;  %v61_v37 = vld [vmem:[#allocation3 + $0x60] sm:$0xff] }
  0x1b   :  { %273 = vmatprep.subr.mxu0 %v68_v23  ;;  %343 = vmatpush1.msra.mxu1 %v133_v24  ;;  %v126_v38 = vld [vmem:[#allocation3 + $0x268] sm:$0xff]  ;;  %v60_v39 = vld [vmem:[#allocation3 + $0x58] sm:$0xff]  ;;  %v125_v40 = vld [vmem:[#allocation3 + $0x260] sm:$0xff] }
  0x1c   :  { %274 = vmatpush1.msra.mxu0 %v67_v25  ;;  %344 = vmatprep.subr.mxu1 %v132_v26  ;;  %v59_v41 = vld [vmem:[#allocation3 + $0x50] sm:$0xff]  ;;  %v124_v42 = vld [vmem:[#allocation3 + $0x258] sm:$0xff]  ;;  %v58_v43 = vld [vmem:[#allocation3 + $0x48] sm:$0xff] }
  0x1d   :  { %275 = vmatprep.subr.mxu0 %v66_v27  ;;  %345 = vmatpush1.msra.mxu1 %v131_v28  ;;  %v123_v44 = vld [vmem:[#allocation3 + $0x250] sm:$0xff]  ;;  %v57_v45 = vld [vmem:[#allocation3 + $0x40] sm:$0xff]  ;;  %v122_v46 = vld [vmem:[#allocation3 + $0x248] sm:$0xff] }
  0x1e   :  { %276 = vmatpush1.msra.mxu0 %v65_v29  ;;  %346 = vmatprep.subr.mxu1 %v130_v30  ;;  %v56_v47 = vld [vmem:[#allocation3 + $0x38] sm:$0xff]  ;;  %v121_v48 = vld [vmem:[#allocation3 + $0x240] sm:$0xff]  ;;  %v55_v49 = vld [vmem:[#allocation3 + $0x30] sm:$0xff] }
  0x1f   :  { %277 = vmatprep.subr.mxu0 %v64_v31  ;;  %347 = vmatpush1.msra.mxu1 %v129_v32  ;;  %v120_v50 = vld [vmem:[#allocation3 + $0x238] sm:$0xff]  ;;  %v54_v51 = vld [vmem:[#allocation3 + $0x28] sm:$0xff]  ;;  %v119_v52 = vld [vmem:[#allocation3 + $0x230] sm:$0xff] }
  0x20   :  { %278 = vmatpush1.msra.mxu0 %v63_v33  ;;  %348 = vmatprep.subr.mxu1 %v128_v34  ;;  %v53_v53 = vld [vmem:[#allocation3 + $0x20] sm:$0xff]  ;;  %v118_v54 = vld [vmem:[#allocation3 + $0x228] sm:$0xff]  ;;  %v52_v55 = vld [vmem:[#allocation3 + $0x18] sm:$0xff] }
  0x21   :  { %279 = vmatprep.subr.mxu0 %v62_v35  ;;  %349 = vmatpush1.msra.mxu1 %v127_v36  ;;  %v117_v56 = vld [vmem:[#allocation3 + $0x220] sm:$0xff]  ;;  %v51_v57 = vld [vmem:[#allocation3 + $0x10] sm:$0xff]  ;;  %v116_v58 = vld [vmem:[#allocation3 + $0x218] sm:$0xff] }
  0x22   :  { %280 = vmatpush1.msra.mxu0 %v61_v37  ;;  %350 = vmatprep.subr.mxu1 %v126_v38  ;;  %v50_v59 = vld [vmem:[#allocation3 + $0x8] sm:$0xff]  ;;  %v115_v60 = vld [vmem:[#allocation3 + $0x210] sm:$0xff]  ;;  %v49_v61 = vld [vmem:[#allocation3] sm:$0xff] }
  0x23   :  { %281 = vmatprep.subr.mxu0 %v60_v39  ;;  %351 = vmatpush1.msra.mxu1 %v125_v40  ;;  %v114_v62 = vld [vmem:[#allocation3 + $0x208] sm:$0xff]  ;;  %v112_v63 = vld [vmem:[#allocation3 + $0x1f8] sm:$0xff]  ;;  %v113_v0 = vld [vmem:[#allocation3 + $0x200] sm:$0xff] }
  0x24   :  { %282 = vmatpush1.msra.mxu0 %v59_v41  ;;  %352 = vmatprep.subr.mxu1 %v124_v42  ;;  %v111_v1 = vld [vmem:[#allocation3 + $0x1f0] sm:$0xff]  ;;  %v176_v2 = vld [vmem:[#allocation3 + $0x3f8] sm:$0xff]  ;;  %v110_v3 = vld [vmem:[#allocation3 + $0x1e8] sm:$0xff] }
  0x25   :  { %283 = vmatprep.subr.mxu0 %v58_v43  ;;  %353 = vmatpush1.msra.mxu1 %v123_v44  ;;  %v175_v4 = vld [vmem:[#allocation3 + $0x3f0] sm:$0xff]  ;;  %v109_v5 = vld [vmem:[#allocation3 + $0x1e0] sm:$0xff]  ;;  %v174_v6 = vld [vmem:[#allocation3 + $0x3e8] sm:$0xff] }
  0x26   :  { %284 = vmatpush1.msra.mxu0 %v57_v45  ;;  %354 = vmatprep.subr.mxu1 %v122_v46  ;;  %v108_v7 = vld [vmem:[#allocation3 + $0x1d8] sm:$0xff]  ;;  %v173_v8 = vld [vmem:[#allocation3 + $0x3e0] sm:$0xff]  ;;  %v107_v9 = vld [vmem:[#allocation3 + $0x1d0] sm:$0xff] }
  0x27   :  { %285 = vmatprep.subr.mxu0 %v56_v47  ;;  %355 = vmatpush1.msra.mxu1 %v121_v48  ;;  %v172_v10 = vld [vmem:[#allocation3 + $0x3d8] sm:$0xff]  ;;  %v106_v11 = vld [vmem:[#allocation3 + $0x1c8] sm:$0xff]  ;;  %v171_v12 = vld [vmem:[#allocation3 + $0x3d0] sm:$0xff] }
  0x28   :  { %286 = vmatpush1.msra.mxu0 %v55_v49  ;;  %356 = vmatprep.subr.mxu1 %v120_v50  ;;  %v105_v13 = vld [vmem:[#allocation3 + $0x1c0] sm:$0xff]  ;;  %v170_v14 = vld [vmem:[#allocation3 + $0x3c8] sm:$0xff]  ;;  %v104_v15 = vld [vmem:[#allocation3 + $0x1b8] sm:$0xff] }
  0x29   :  { %287 = vmatprep.subr.mxu0 %v54_v51  ;;  %357 = vmatpush1.msra.mxu1 %v119_v52  ;;  %v169_v16 = vld [vmem:[#allocation3 + $0x3c0] sm:$0xff]  ;;  %v103_v17 = vld [vmem:[#allocation3 + $0x1b0] sm:$0xff]  ;;  %v168_v18 = vld [vmem:[#allocation3 + $0x3b8] sm:$0xff] }
  0x2a   :  { %288 = vmatpush1.msra.mxu0 %v53_v53  ;;  %358 = vmatprep.subr.mxu1 %v118_v54  ;;  %v102_v19 = vld [vmem:[#allocation3 + $0x1a8] sm:$0xff]  ;;  %v167_v20 = vld [vmem:[#allocation3 + $0x3b0] sm:$0xff]  ;;  %v101_v21 = vld [vmem:[#allocation3 + $0x1a0] sm:$0xff] }
  0x2b   :  { %289 = vmatprep.subr.mxu0 %v52_v55  ;;  %359 = vmatpush1.msra.mxu1 %v117_v56  ;;  %v166_v22 = vld [vmem:[#allocation3 + $0x3a8] sm:$0xff]  ;;  %v100_v23 = vld [vmem:[#allocation3 + $0x198] sm:$0xff]  ;;  %v165_v24 = vld [vmem:[#allocation3 + $0x3a0] sm:$0xff] }
  0x2c   :  { %290 = vmatpush1.msra.mxu0 %v51_v57  ;;  %360 = vmatprep.subr.mxu1 %v116_v58  ;;  %v99_v25 = vld [vmem:[#allocation3 + $0x190] sm:$0xff]  ;;  %v164_v26 = vld [vmem:[#allocation3 + $0x398] sm:$0xff]  ;;  %v98_v27 = vld [vmem:[#allocation3 + $0x188] sm:$0xff] }
  0x2d   :  { %291 = vmatprep.subr.mxu0 %v50_v59  ;;  %361 = vmatpush1.msra.mxu1 %v115_v60  ;;  %v163_v28 = vld [vmem:[#allocation3 + $0x390] sm:$0xff]  ;;  %v97_v29 = vld [vmem:[#allocation3 + $0x180] sm:$0xff]  ;;  %v162_v30 = vld [vmem:[#allocation3 + $0x388] sm:$0xff] }
  0x2e   :  { %292 = vmatpush1.msra.mxu0 %v49_v61  ;;  %362 = vmatprep.subr.mxu1 %v114_v62  ;;  %v96_v31 = vld [vmem:[#allocation3 + $0x178] sm:$0xff]  ;;  %v161_v32 = vld [vmem:[#allocation3 + $0x380] sm:$0xff]  ;;  %v95_v33 = vld [vmem:[#allocation3 + $0x170] sm:$0xff] }
  0x2f   :  { %293 = vmatprep.subr.mxu0 %v112_v63  ;;  %363 = vmatpush1.msra.mxu1 %v113_v0  ;;  %v160_v34 = vld [vmem:[#allocation3 + $0x378] sm:$0xff]  ;;  %v94_v35 = vld [vmem:[#allocation3 + $0x168] sm:$0xff]  ;;  %v159_v36 = vld [vmem:[#allocation3 + $0x370] sm:$0xff] }
  0x30   :  { %294 = vmatpush2.msra.mxu0 %v111_v1  ;;  %364 = vmatprep.subr.mxu1 %v176_v2  ;;  %v93_v37 = vld [vmem:[#allocation3 + $0x160] sm:$0xff]  ;;  %v158_v38 = vld [vmem:[#allocation3 + $0x368] sm:$0xff]  ;;  %v92_v39 = vld [vmem:[#allocation3 + $0x158] sm:$0xff] }
  0x31   :  { %295 = vmatprep.subr.mxu0 %v110_v3  ;;  %365 = vmatpush2.msra.mxu1 %v175_v4  ;;  %v157_v40 = vld [vmem:[#allocation3 + $0x360] sm:$0xff]  ;;  %v91_v41 = vld [vmem:[#allocation3 + $0x150] sm:$0xff]  ;;  %v156_v42 = vld [vmem:[#allocation3 + $0x358] sm:$0xff] }
  0x32   :  { %296 = vmatpush2.msra.mxu0 %v109_v5  ;;  %366 = vmatprep.subr.mxu1 %v174_v6  ;;  %v90_v43 = vld [vmem:[#allocation3 + $0x148] sm:$0xff]  ;;  %v155_v44 = vld [vmem:[#allocation3 + $0x350] sm:$0xff]  ;;  %v89_v45 = vld [vmem:[#allocation3 + $0x140] sm:$0xff] }
  0x33   :  { %297 = vmatprep.subr.mxu0 %v108_v7  ;;  %367 = vmatpush2.msra.mxu1 %v173_v8  ;;  %v154_v46 = vld [vmem:[#allocation3 + $0x348] sm:$0xff]  ;;  %v88_v47 = vld [vmem:[#allocation3 + $0x138] sm:$0xff]  ;;  %v153_v48 = vld [vmem:[#allocation3 + $0x340] sm:$0xff] }
  0x34   :  { %298 = vmatpush2.msra.mxu0 %v107_v9  ;;  %368 = vmatprep.subr.mxu1 %v172_v10  ;;  %v87_v49 = vld [vmem:[#allocation3 + $0x130] sm:$0xff]  ;;  %v152_v50 = vld [vmem:[#allocation3 + $0x338] sm:$0xff]  ;;  %v86_v51 = vld [vmem:[#allocation3 + $0x128] sm:$0xff] }
  0x35   :  { %299 = vmatprep.subr.mxu0 %v106_v11  ;;  %369 = vmatpush2.msra.mxu1 %v171_v12  ;;  %v151_v52 = vld [vmem:[#allocation3 + $0x330] sm:$0xff]  ;;  %v85_v53 = vld [vmem:[#allocation3 + $0x120] sm:$0xff]  ;;  %v150_v54 = vld [vmem:[#allocation3 + $0x328] sm:$0xff] }
  0x36   :  { %300 = vmatpush2.msra.mxu0 %v105_v13  ;;  %370 = vmatprep.subr.mxu1 %v170_v14  ;;  %v84_v55 = vld [vmem:[#allocation3 + $0x118] sm:$0xff]  ;;  %v149_v56 = vld [vmem:[#allocation3 + $0x320] sm:$0xff]  ;;  %v83_v57 = vld [vmem:[#allocation3 + $0x110] sm:$0xff] }
  0x37   :  { %301 = vmatprep.subr.mxu0 %v104_v15  ;;  %371 = vmatpush2.msra.mxu1 %v169_v16  ;;  %v148_v58 = vld [vmem:[#allocation3 + $0x318] sm:$0xff]  ;;  %v82_v59 = vld [vmem:[#allocation3 + $0x108] sm:$0xff]  ;;  %v81_v61 = vld [vmem:[#allocation3 + $0x100] sm:$0xff] }
  0x38   :  { %302 = vmatpush2.msra.mxu0 %v103_v17  ;;  %372 = vmatprep.subr.mxu1 %v168_v18  ;;  %v43_v60 = vld [vmem:[%s980_s0 + $0x8] sm:$0xff]  ;;  %v147_v62 = vld [vmem:[#allocation3 + $0x310] sm:$0xff]  ;;  %v42_v63 = vld [vmem:[%s980_s0] sm:$0xff] }
  0x39   :  { %303 = vmatprep.subr.mxu0 %v102_v19  ;;  %373 = vmatpush2.msra.mxu1 %v167_v20  ;;  %v146_v0 = vld [vmem:[#allocation3 + $0x308] sm:$0xff]  ;;  %v208_v1 = vld [vmem:[#allocation3 + $0x4f8] sm:$0xff]  ;;  %v145_v2 = vld [vmem:[#allocation3 + $0x300] sm:$0xff] }
  0x3a   :  { %304 = vmatpush2.msra.mxu0 %v101_v21  ;;  %374 = vmatprep.subr.mxu1 %v166_v22  ;;  %v45_v3 = vld [vmem:[%s980_s0 + $0x18] sm:$0xff]  ;;  %v207_v4 = vld [vmem:[#allocation3 + $0x4f0] sm:$0xff]  ;;  %v206_v6 = vld [vmem:[#allocation3 + $0x4e8] sm:$0xff]  ;;  %v803_v22 = vmov 0.0  }
  0x3b   :  { %305 = vmatprep.subr.mxu0 %v100_v23  ;;  %375 = vmatpush2.msra.mxu1 %v165_v24  ;;  %v44_v5 = vld [vmem:[%s980_s0 + $0x10] sm:$0xff]  ;;  %v205_v7 = vld [vmem:[#allocation3 + $0x4e0] sm:$0xff]  ;;  %v244_v8 = vld [vmem:[#allocation3 + $0x618] sm:$0xff] }
  0x3c   :  { %306 = vmatpush2.msra.mxu0 %v99_v25  ;;  %376 = vmatprep.subr.mxu1 %v164_v26  ;;  %v204_v9 = vld [vmem:[#allocation3 + $0x4d8] sm:$0xff]  ;;  %v243_v10 = vld [vmem:[#allocation3 + $0x610] sm:$0xff]  ;;  %v242_v12 = vld [vmem:[#allocation3 + $0x608] sm:$0xff] }
  0x3d   :  { %307 = vmatprep.subr.mxu0 %v98_v27  ;;  %377 = vmatpush2.msra.mxu1 %v163_v28  ;;  %v203_v11 = vld [vmem:[#allocation3 + $0x4d0] sm:$0xff]  ;;  %v202_v13 = vld [vmem:[#allocation3 + $0x4c8] sm:$0xff]  ;;  %v201_v15 = vld [vmem:[#allocation3 + $0x4c0] sm:$0xff] }
  0x3e   :  { %308 = vmatpush2.msra.mxu0 %v97_v29  ;;  %378 = vmatprep.subr.mxu1 %v162_v30  ;;  %v47_v14 = vld [vmem:[%s980_s0 + $0x28] sm:$0xff]  ;;  %v241_v16 = vld [vmem:[#allocation3 + $0x600] sm:$0xff]  ;;  %v200_v17 = vld [vmem:[#allocation3 + $0x4b8] sm:$0xff] }
  0x3f   :  { %309 = vmatprep.subr.mxu0 %v96_v31  ;;  %379 = vmatpush2.msra.mxu1 %v161_v32  ;;  %v199_v18 = vld [vmem:[#allocation3 + $0x4b0] sm:$0xff]  ;;  %v198_v20 = vld [vmem:[#allocation3 + $0x4a8] sm:$0xff]  ;;  %v197_v21 = vld [vmem:[#allocation3 + $0x4a0] sm:$0xff] }
  0x40   :  { %310 = vmatpush2.msra.mxu0 %v95_v33  ;;  %380 = vmatprep.subr.mxu1 %v160_v34  ;;  %v48_v19 = vld [vmem:[%s980_s0 + $0x30] sm:$0xff]  ;;  %v196_v23 = vld [vmem:[#allocation3 + $0x498] sm:$0xff]  ;;  %v194_v25 = vld [vmem:[#allocation3 + $0x488] sm:$0xff] }
  0x41   :  { %311 = vmatprep.subr.mxu0 %v94_v35  ;;  %381 = vmatpush2.msra.mxu1 %v159_v36  ;;  %v195_v24 = vld [vmem:[#allocation3 + $0x490] sm:$0xff]  ;;  %v193_v26 = vld [vmem:[#allocation3 + $0x480] sm:$0xff]  ;;  %v192_v27 = vld [vmem:[#allocation3 + $0x478] sm:$0xff] }
  0x42   :  { %312 = vmatpush2.msra.mxu0 %v93_v37  ;;  %382 = vmatprep.subr.mxu1 %v158_v38  ;;  %v191_v28 = vld [vmem:[#allocation3 + $0x470] sm:$0xff]  ;;  %v190_v29 = vld [vmem:[#allocation3 + $0x468] sm:$0xff]  ;;  %v189_v30 = vld [vmem:[#allocation3 + $0x460] sm:$0xff] }
  0x43   :  { %313 = vmatprep.subr.mxu0 %v92_v39  ;;  %383 = vmatpush2.msra.mxu1 %v157_v40  ;;  %v188_v31 = vld [vmem:[#allocation3 + $0x458] sm:$0xff]  ;;  %v187_v32 = vld [vmem:[#allocation3 + $0x450] sm:$0xff]  ;;  %v186_v33 = vld [vmem:[#allocation3 + $0x448] sm:$0xff] }
  0x44   :  { %314 = vmatpush2.msra.mxu0 %v91_v41  ;;  %384 = vmatprep.subr.mxu1 %v156_v42  ;;  %v185_v34 = vld [vmem:[#allocation3 + $0x440] sm:$0xff]  ;;  %v184_v35 = vld [vmem:[#allocation3 + $0x438] sm:$0xff]  ;;  %v183_v36 = vld [vmem:[#allocation3 + $0x430] sm:$0xff] }
  0x45   :  { %315 = vmatprep.subr.mxu0 %v90_v43  ;;  %385 = vmatpush2.msra.mxu1 %v155_v44  ;;  %v182_v37 = vld [vmem:[#allocation3 + $0x428] sm:$0xff]  ;;  %v181_v38 = vld [vmem:[#allocation3 + $0x420] sm:$0xff]  ;;  %v180_v39 = vld [vmem:[#allocation3 + $0x418] sm:$0xff] }
  0x46   :  { %316 = vmatpush2.msra.mxu0 %v89_v45  ;;  %386 = vmatprep.subr.mxu1 %v154_v46  ;;  %v179_v40 = vld [vmem:[#allocation3 + $0x410] sm:$0xff]  ;;  %v178_v41 = vld [vmem:[#allocation3 + $0x408] sm:$0xff]  ;;  %v177_v42 = vld [vmem:[#allocation3 + $0x400] sm:$0xff] }
  0x47   :  { %317 = vmatprep.subr.mxu0 %v88_v47  ;;  %387 = vmatpush2.msra.mxu1 %v153_v48  ;;  %v240_v43 = vld [vmem:[#allocation3 + $0x5f8] sm:$0xff]  ;;  %v239_v44 = vld [vmem:[#allocation3 + $0x5f0] sm:$0xff]  ;;  %v238_v45 = vld [vmem:[#allocation3 + $0x5e8] sm:$0xff] }
  0x48   :  { %318 = vmatpush2.msra.mxu0 %v87_v49  ;;  %388 = vmatprep.subr.mxu1 %v152_v50  ;;  %v237_v46 = vld [vmem:[#allocation3 + $0x5e0] sm:$0xff]  ;;  %v236_v47 = vld [vmem:[#allocation3 + $0x5d8] sm:$0xff]  ;;  %v235_v48 = vld [vmem:[#allocation3 + $0x5d0] sm:$0xff] }
  0x49   :  { %319 = vmatprep.subr.mxu0 %v86_v51  ;;  %389 = vmatpush2.msra.mxu1 %v151_v52  ;;  %v234_v49 = vld [vmem:[#allocation3 + $0x5c8] sm:$0xff]  ;;  %v233_v50 = vld [vmem:[#allocation3 + $0x5c0] sm:$0xff]  ;;  %v232_v51 = vld [vmem:[#allocation3 + $0x5b8] sm:$0xff] }
  0x4a   :  { %320 = vmatpush2.msra.mxu0 %v85_v53  ;;  %390 = vmatprep.subr.mxu1 %v150_v54  ;;  %v231_v52 = vld [vmem:[#allocation3 + $0x5b0] sm:$0xff]  ;;  %v230_v53 = vld [vmem:[#allocation3 + $0x5a8] sm:$0xff]  ;;  %v229_v54 = vld [vmem:[#allocation3 + $0x5a0] sm:$0xff] }
  0x4b   :  { %321 = vmatprep.subr.mxu0 %v84_v55  ;;  %391 = vmatpush2.msra.mxu1 %v149_v56  ;;  %v228_v55 = vld [vmem:[#allocation3 + $0x598] sm:$0xff]  ;;  %v227_v56 = vld [vmem:[#allocation3 + $0x590] sm:$0xff] }
  0x4c   :  { %322 = vmatpush2.msra.mxu0 %v83_v57  ;;  %392 = vmatprep.subr.mxu1 %v148_v58  ;;  %v226_v57 = vld [vmem:[#allocation3 + $0x588] sm:$0xff]  ;;  %v225_v58 = vld [vmem:[#allocation3 + $0x580] sm:$0xff] }
  0x4d   :  { %323 = vmatprep.subr.mxu0 %v82_v59  ;;  %325 = vmatprep.mubr.f32.mxu0 %v43_v60  ;;  %v224_v59 = vld [vmem:[#allocation3 + $0x578] sm:$0xff]  ;;  %v223_v60 = vld [vmem:[#allocation3 + $0x570] sm:$0xff] }
  0x4e   :  { %324 = vmatpush2.msra.mxu0 %v81_v61  ;;  %393 = vmatpush2.msra.mxu1 %v147_v62  ;;  %v222_v61 = vld [vmem:[#allocation3 + $0x568] sm:$0xff]  ;;  %v221_v62 = vld [vmem:[#allocation3 + $0x560] sm:$0xff] }
  0x4f   :  { %326 = vmatmul.mubr.f32.vlgmr.msra.gmra.mxu0 %v42_v63  ;;  %394 = vmatprep.subr.mxu1 %v146_v0  ;;  %v220_v63 = vld [vmem:[#allocation3 + $0x558] sm:$0xff]  ;;  %v219_v0 = vld [vmem:[#allocation3 + $0x550] sm:$0xff] }
  0x50   :  { %403 = vmatprep.subr.mxu0 %v208_v1  ;;  %395 = vmatpush2.msra.mxu1 %v145_v2  ;;  %v218_v1 = vld [vmem:[#allocation3 + $0x548] sm:$0xff]  ;;  %v217_v2 = vld [vmem:[#allocation3 + $0x540] sm:$0xff] }
  0x51   :  { %396 = vmatprep.mubr.f32.mxu1 %v45_v3  ;;  %404 = vmatpush1.msra.mxu0 %v207_v4  ;;  %v216_v3 = vld [vmem:[#allocation3 + $0x538] sm:$0xff]  ;;  %v215_v4 = vld [vmem:[#allocation3 + $0x530] sm:$0xff] }
  0x52   :  { %397 = vmatmul.mubr.f32.vlgmr.msra.gmra.mxu1 %v44_v5  ;;  %405 = vmatprep.subr.mxu0 %v206_v6  ;;  %v214_v5 = vld [vmem:[#allocation3 + $0x528] sm:$0xff]  ;;  %v213_v6 = vld [vmem:[#allocation3 + $0x520] sm:$0xff] }
  0x53   :  { %406 = vmatpush1.msra.mxu0 %v205_v7  ;;  %502 = vmatprep.subr.mxu1 %v244_v8  ;;  %v212_v7 = vld [vmem:[#allocation3 + $0x518] sm:$0xff]  ;;  %v211_v8 = vld [vmem:[#allocation3 + $0x510] sm:$0xff] }
  0x54   :  { %407 = vmatprep.subr.mxu0 %v204_v9  ;;  %503 = vmatpush1.msra.mxu1 %v243_v10  ;;  %v210_v9 = vld [vmem:[#allocation3 + $0x508] sm:$0xff]  ;;  %v209_v10 = vld [vmem:[#allocation3 + $0x500] sm:$0xff] }
  0x55   :  { %408 = vmatpush1.msra.mxu0 %v203_v11  ;;  %504 = vmatprep.subr.mxu1 %v242_v12  ;;  %v46_v11 = vld [vmem:[%s980_s0 + $0x20] sm:$0xff]  ;;  %v582_v12 = vld [vmem:[%s983_s3 + $0xf8] sm:$0xff] }
  0x56   :  { %409 = vmatprep.subr.mxu0 %v202_v13  ;;  %467 = vmatprep.mubr.f32.mxu0 %v47_v14  ;;  %v566_v13 = vld [vmem:[%s983_s3 + $0x78] sm:$0xff]  ;;  %v581_v14 = vld [vmem:[%s983_s3 + $0xf0] sm:$0xff] }
  0x57   :  { %410 = vmatpush1.msra.mxu0 %v201_v15  ;;  %505 = vmatpush1.msra.mxu1 %v241_v16  ;;  %v565_v15 = vld [vmem:[%s983_s3 + $0x70] sm:$0xff]  ;;  %v580_v16 = vld [vmem:[%s983_s3 + $0xe8] sm:$0xff] }
  0x58   :  { %411 = vmatprep.subr.mxu0 %v200_v17  ;;  %538 = vmatprep.mubr.f32.mxu1 %v803_v22  ;;  %v564_v17 = vld [vmem:[%s983_s3 + $0x68] sm:$0xff]  ;;  %v577_v22 = vld [vmem:[%s983_s3 + $0xd0] sm:$0xff] }
  0x59   :  { %412 = vmatpush1.msra.mxu0 %v199_v18  ;;  %709 = vmatmul.mubr.msk.f32.vlgmr.msra.gmra.mxu1 %vm257_vm0, %v48_v19  ;;  %v579_v18 = vld [vmem:[%s983_s3 + $0xe0] sm:$0xff] }
  0x5a   :  { %413 = vmatprep.subr.mxu0 %v198_v20  ;;  %712 = vmatprep.subr.mxu1 %v582_v12  ;;  %v563_v19 = vld [vmem:[%s983_s3 + $0x60] sm:$0xff]  ;;  %v578_v20 = vld [vmem:[%s983_s3 + $0xd8] sm:$0xff] }
  0x5b   :  { %414 = vmatpush1.msra.mxu0 %v197_v21  ;;  %713 = vmatpush3.msra.mxu1 %v566_v13  ;;  %v562_v21 = vld [vmem:[%s983_s3 + $0x58] sm:$0xff]  ;;  %v711_v13 = vld [vmem:[%s985_s5] ss:$0 sm:$0xff] }
  0x5c   :  { %415 = vmatprep.subr.mxu0 %v196_v23  ;;  %714 = vmatprep.subr.mxu1 %v581_v14  ;;  %v561_v23 = vld [vmem:[%s983_s3 + $0x50] sm:$0xff] }
  0x5d   :  { %416 = vmatpush1.msra.mxu0 %v195_v24  ;;  %715 = vmatpush3.msra.mxu1 %v565_v15  ;;  %v576_v24 = vld [vmem:[%s983_s3 + $0xc8] sm:$0xff] }
  0x5e   :  { %417 = vmatprep.subr.mxu0 %v194_v25  ;;  %716 = vmatprep.subr.mxu1 %v580_v16  ;;  %v560_v25 = vld [vmem:[%s983_s3 + $0x48] sm:$0xff] }
  0x5f   :  { %418 = vmatpush1.msra.mxu0 %v193_v26  ;;  %717 = vmatpush3.msra.mxu1 %v564_v17  ;;  %v575_v26 = vld [vmem:[%s983_s3 + $0xc0] sm:$0xff]  ;;  %v676_v17 = vstv %s986_s6 }
  0x60   :  { %419 = vmatprep.subr.mxu0 %v192_v27  ;;  %718 = vmatprep.subr.mxu1 %v579_v18  ;;  %v559_v27 = vld [vmem:[%s983_s3 + $0x40] sm:$0xff] }
  0x61   :  { %420 = vmatpush1.msra.mxu0 %v191_v28  ;;  %719 = vmatpush3.msra.mxu1 %v563_v19  ;;  %v574_v28 = vld [vmem:[%s983_s3 + $0xb8] sm:$0xff] }
  0x62   :  { %421 = vmatprep.subr.mxu0 %v190_v29  ;;  %720 = vmatprep.subr.mxu1 %v578_v20  ;;  %v558_v29 = vld [vmem:[%s983_s3 + $0x38] sm:$0xff] }
  0x63   :  { %422 = vmatpush1.msra.mxu0 %v189_v30  ;;  %721 = vmatpush3.msra.mxu1 %v562_v21  ;;  %v573_v30 = vld [vmem:[%s983_s3 + $0xb0] sm:$0xff] }
  0x64   :  { %423 = vmatprep.subr.mxu0 %v188_v31  ;;  %722 = vmatprep.subr.mxu1 %v577_v22  ;;  %v557_v31 = vld [vmem:[%s983_s3 + $0x30] sm:$0xff] }
  0x65   :  { %424 = vmatpush1.msra.mxu0 %v187_v32  ;;  %723 = vmatpush3.msra.mxu1 %v561_v23  ;;  %v572_v32 = vld [vmem:[%s983_s3 + $0xa8] sm:$0xff] }
  0x66   :  { %425 = vmatprep.subr.mxu0 %v186_v33  ;;  %724 = vmatprep.subr.mxu1 %v576_v24  ;;  %v556_v33 = vld [vmem:[%s983_s3 + $0x28] sm:$0xff] }
  0x67   :  { %426 = vmatpush1.msra.mxu0 %v185_v34  ;;  %725 = vmatpush3.msra.mxu1 %v560_v25  ;;  %v571_v34 = vld [vmem:[%s983_s3 + $0xa0] sm:$0xff] }
  0x68   :  { %427 = vmatprep.subr.mxu0 %v184_v35  ;;  %726 = vmatprep.subr.mxu1 %v575_v26  ;;  %v555_v35 = vld [vmem:[%s983_s3 + $0x20] sm:$0xff] }
  0x69   :  { %428 = vmatpush1.msra.mxu0 %v183_v36  ;;  %727 = vmatpush3.msra.mxu1 %v559_v27  ;;  %v570_v36 = vld [vmem:[%s983_s3 + $0x98] sm:$0xff] }
  0x6a   :  { %429 = vmatprep.subr.mxu0 %v182_v37  ;;  %728 = vmatprep.subr.mxu1 %v574_v28  ;;  %v554_v37 = vld [vmem:[%s983_s3 + $0x18] sm:$0xff] }
  0x6b   :  { %430 = vmatpush1.msra.mxu0 %v181_v38  ;;  %729 = vmatpush3.msra.mxu1 %v558_v29  ;;  %v569_v38 = vld [vmem:[%s983_s3 + $0x90] sm:$0xff] }
  0x6c   :  { %431 = vmatprep.subr.mxu0 %v180_v39  ;;  %730 = vmatprep.subr.mxu1 %v573_v30  ;;  %v553_v39 = vld [vmem:[%s983_s3 + $0x10] sm:$0xff] }
  0x6d   :  { %432 = vmatpush1.msra.mxu0 %v179_v40  ;;  %731 = vmatpush3.msra.mxu1 %v557_v31  ;;  %v568_v40 = vld [vmem:[%s983_s3 + $0x88] sm:$0xff] }
  0x6e   :  { %433 = vmatprep.subr.mxu0 %v178_v41  ;;  %732 = vmatprep.subr.mxu1 %v572_v32  ;;  %v552_v41 = vld [vmem:[%s983_s3 + $0x8] sm:$0xff] }
  0x6f   :  { %434 = vmatpush1.msra.mxu0 %v177_v42  ;;  %733 = vmatpush3.msra.mxu1 %v556_v33  ;;  %v567_v42 = vld [vmem:[%s983_s3 + $0x80] sm:$0xff] }
  0x70   :  { %435 = vmatprep.subr.mxu0 %v240_v43  ;;  %734 = vmatprep.subr.mxu1 %v571_v34  ;;  %v551_v43 = vld [vmem:[%s983_s3] sm:$0xff] }
  0x71   :  { %436 = vmatpush2.msra.mxu0 %v239_v44  ;;  %735 = vmatpush3.msra.mxu1 %v555_v35  ;;  %v247_v44 = vlaneseq }
  0x72   :  { %437 = vmatprep.subr.mxu0 %v238_v45  ;;  %736 = vmatprep.subr.mxu1 %v570_v36 }
  0x73   :  { %438 = vmatpush2.msra.mxu0 %v237_v46  ;;  %737 = vmatpush3.msra.mxu1 %v554_v37  ;;  %v248_v45 = vshrl.u32 %v247_v44, 7  ;;  %v686_v24 = vand.u32 127, %v247_v44 }
  0x74   :  { %439 = vmatprep.subr.mxu0 %v236_v47  ;;  %738 = vmatprep.subr.mxu1 %v569_v38  ;;  %v245_v47 = vld [vmem:[%s982_s2] sm:$0x3] }
  0x75   :  { %440 = vmatpush2.msra.mxu0 %v235_v48  ;;  %739 = vmatpush3.msra.mxu1 %v553_v39  ;;  %v249_v46 = vsub.s32 0, %v248_v45  ;;  %v253_v48 = vsub.s32 1, %v248_v45  ;;  %v689_v25 = vsub.s32 %v686_v24, %v248_v45 }
  0x76   :  { %441 = vmatprep.subr.mxu0 %v234_v49  ;;  %740 = vmatprep.subr.mxu1 %v568_v40 }
  0x77   :  { %442 = vmatpush2.msra.mxu0 %v233_v50  ;;  %741 = vmatpush3.msra.mxu1 %v552_v41  ;;  %v250_v50 = vrot.slane %v245_v47, %v249_v46 }
  0x78   :  { %443 = vmatprep.subr.mxu0 %v232_v51  ;;  %742 = vmatprep.subr.mxu1 %v567_v42  ;;  %v254_v51 = vrot.slane %v245_v47, %v253_v48 }
  0x79   :  { %444 = vmatpush2.msra.mxu0 %v231_v52  ;;  %743 = vmatpush3.msra.mxu1 %v551_v43 }
  0x7a   :  { %445 = vmatprep.subr.mxu0 %v230_v53 }
  0x7b   :  { %446 = vmatpush2.msra.mxu0 %v229_v54 }
  0x7c   :  { %447 = vmatprep.subr.mxu0 %v228_v55 }
  0x7d   :  { %448 = vmatpush2.msra.mxu0 %v227_v56 }
  0x7e   :  { %449 = vmatprep.subr.mxu0 %v226_v57 }
  0x7f   :  { %450 = vmatpush2.msra.mxu0 %v225_v58 }
  0x80   :  { %451 = vmatprep.subr.mxu0 %v224_v59 }
  0x81   :  { %452 = vmatpush2.msra.mxu0 %v223_v60 }
  0x82   :  { %453 = vmatprep.subr.mxu0 %v222_v61 }
  0x83   :  { %454 = vmatpush2.msra.mxu0 %v221_v62 }
  0x84   :  { %455 = vmatprep.subr.mxu0 %v220_v63 }
  0x85   :  { %456 = vmatpush2.msra.mxu0 %v219_v0 }
  0x86   :  { %457 = vmatprep.subr.mxu0 %v218_v1 }
  0x87   :  { %458 = vmatpush2.msra.mxu0 %v217_v2 }
  0x88   :  { %459 = vmatprep.subr.mxu0 %v216_v3 }
  0x89   :  { %460 = vmatpush2.msra.mxu0 %v215_v4 }
  0x8a   :  { %461 = vmatprep.subr.mxu0 %v214_v5 }
  0x8b   :  { %462 = vmatpush2.msra.mxu0 %v213_v6 }
  0x8c   :  { %463 = vmatprep.subr.mxu0 %v212_v7 }
  0x8d   :  { %464 = vmatpush2.msra.mxu0 %v211_v8  ;;  %v710_v8 = vld [vmem:[%s984_s4] ss:$0 sm:$0xff]  ;;  %s804_s4 = smov [#allocation6]  }
  0x8e   :  { %465 = vmatprep.subr.mxu0 %v210_v9  ;;  %s700_s5 = sshll.u32 %s804_s4, 4  ;;  %s701_s5 = int_to_ptr.vmem [resolvable:$true] %s700_s5 }
  0x8f   :  { %466 = vmatpush2.msra.mxu0 %v209_v10  ;;  %s776_s16 = scalar_lea.vmem %s701_s5, 16  ;;  %s780_s6 = scalar_lea.vmem %s701_s5, 32 }
  0x90   :  { %468 = vmatmul.mubr.f32.vlgmr.msra.gmra.mxu0 %v46_v11  ;;  %p777_p5 = scmp.ne.s32.totalorder %s701_s5, %s776_s16  ;;  %p781_p6 = scmp.lt.s32.totalorder %s701_s5, %s701_s5 }
  0x91   :  { %p782_p7 = scmp.lt.s32.totalorder %s780_s6, %s776_s16 }
  0x93   :  { %p783_p8 = por %p782_p7, %p781_p6 }
  0x95   :  { %p784_p9 = pnand %p783_p8, %p777_p5 }
 0x10f   :  { %v327_v49 = vpop.f32.mrf.mxu0 }
 0x110   :  { %v328_v54 = vadd.f32 %v327_v49, %v250_v50 }
 0x111   :  { %v329_v52 = vpop.f32.mrf.mxu0 }
 0x112   :  { %v398_v53 = vpop.f32.mrf.mxu1  ;;  %v330_v55 = vadd.f32 %v329_v52, %v254_v51 }
 0x113   :  { %v399_v57 = vadd.f32 %v398_v53, %v328_v54 }
 0x114   :  { %v400_v56 = vpop.f32.mrf.mxu1 }
 0x115   :  { %v401_v60 = vadd.f32 %v400_v56, %v330_v55 }
 0x119   :  { %v540_v59 = vpop.f32.mrf.mxu1 }
 0x11b   :  { %v542_v1 = vpop.f32.mrf.mxu1 }
 0x150   :  { %v469_v58 = vpop.f32.mrf.mxu0 }
 0x151   :  { %v470_v61 = vadd.f32 %v469_v58, %v399_v57 }
 0x152   :  { %v471_v62 = vpop.f32.mrf.mxu0 }
 0x153   :  { %v541_v63 = vadd.f32 %v540_v59, %v470_v61  ;;  %v472_v0 = vadd.f32 %v471_v62, %v401_v60 }
 0x155   :  { %v543_v2 = vadd.f32 %v542_v1, %v472_v0  ;;  %v547_v3 = vmul.f32 0.2, %v541_v63  ;;  %vm545_vm1 = vcmp.ge.f32.partialorder %v541_v63, 0.0 }
 0x157   :  { %v548_v4 = vmul.f32 0.2, %v543_v2  ;;  %vm546_vm2 = vcmp.ge.f32.partialorder %v543_v2, 0.0  ;;  %v549_v6 = vsel %vm545_vm1, %v541_v63, %v547_v3 }
 0x159   :  { %v550_v5 = vsel %vm546_vm2, %v543_v2, %v548_v4 }
 0x15a   :  { %654 = vmatprep.mubr.f32.mxu1 %v550_v5 }
 0x15b   :  { %655 = vmatmul.mubr.f32.vlgmr.msra.gmra.mxu1 %v549_v6 }
 0x21b   :  { %v744_v7 = vpop.f32.mrf.mxu1 }
 0x21d   :  { %v745_v9 = vpop.f32.mrf.mxu1 }
 0x21e   :  { %v746_v10 = vadd.f32 %v745_v9, %v744_v7 }
 0x220   :  { %v657_v11 = vadd.f32 %v746_v10, %v710_v8 }
 0x222   :  { %v661_v12 = vmul.f32 0.2, %v657_v11  ;;  %vm660_vm3 = vcmp.ge.f32.partialorder %v657_v11, 0.0 }
 0x224   :  { %v662_v14 = vsel %vm660_vm3, %v657_v11, %v661_v12 }
 0x225   :  { %v670_v15 = vmul.f32 %v711_v13, %v662_v14 }
 0x227   :  { %v672_v16 = vsel %vm671_vm4, %v670_v15, 0.0 }
 0x228   :  { %673 = vadd.xlane.f32.xlu0 %v672_v16 }
 0x2b1   :  { %v674_v18 = vpop.xlane.xlu0 %673 }
 0x2b2   :  { %v677_v19 = vadd.f32 %v676_v17, %v674_v18 }
 0x2b4   :  { %v678_v20 = vsub.f32 0.0, %v677_v19 }
 0x2b6   :  { %v679_v21 = vmul.f32 1.442695, %v678_v20 }
 0x2b8   :  { %752 = vpow2.f32 %v679_v21 }
 0x2c5   :  { %v753_v22 = vpop.eup %752 }
 0x2c6   :  { %v681_v23 = vadd.f32 1.0, %v753_v22 }
 0x2c8   :  { %754 = vrcp.f32 %v681_v23 }
 0x2d5   :  { %v755_v26 = vpop.eup %754 }
 0x2d6   :  { %v690_v27 = vrot.slane %v755_v26, %v689_v25 }
 0x2d8   :  { %693 = vst.msk [vmem:[#allocation6] sm:$0x1] %vm692_vm5, %v690_v27 }
 0x2d9   :  { %787 = shalt.err (!%p784_p9)
}
 0x2da   :  { %703 = dma.vmem_to_hbm [thread:$0]  %s701_s5, 16, %s987_s7, [#allocation5]  }
 0x2db   :  { %798 = dma.done.wait [#allocation5], 16  }
 0x2dc   :  { %799 = vsyncadd [#allocation5], 4294967280 }
 0x2dd   :  { %707 = vsyncpa [#allocation4], 1 }
 0x2de   :  { %708 = vsyncpa [#allocation5], 1 }

</bundles_post_ra>
